<compile_context>
chip_gen: v7x
topology: tpu7x:2x2x1
jax: 0.10.0
libtpu: 0.0.40
codegen_flags: <defaults>
</compile_context>

<pallas_src>
import math

import jax
import jax.numpy as jnp
from jax.experimental import pallas as pl
from jax.experimental.pallas import tpu as pltpu

LANE = 128
SUBLANE = 8


def _round_up(n, m):
    return ((n + m - 1) // m) * m


def _mlp_kernel(x_ref,
                w1_ref, b1_ref,
                w2_ref, b2_ref,
                w3_ref, b3_ref,
                w4_ref, b4_ref,
                w5_ref, b5_ref,
                o_ref):
    """Fused 5x (bf16 matmul + f32 bias + relu) on one (TB, feat) batch tile.

    Weights/biases are VMEM-resident across all batch-grid steps (their
    BlockSpec index_map is constant), so each step only DMAs its x/out tile.
    """

    def dense_relu(h_f32, w_ref, b_ref):
        # MXU: bf16 inputs, f32 accumulation.
        y = jnp.dot(h_f32.astype(jnp.bfloat16), w_ref[...],
                    preferred_element_type=jnp.float32)
        # Elementwise bias + ReLU in f32 (safe on v5e's f32-only VPU).
        return jnp.maximum(y + b_ref[...], 0.0)

    h = x_ref[...].astype(jnp.float32)
    h = dense_relu(h, w1_ref, b1_ref)
    h = dense_relu(h, w2_ref, b2_ref)
    h = dense_relu(h, w3_ref, b3_ref)
    h = dense_relu(h, w4_ref, b4_ref)
    h = dense_relu(h, w5_ref, b5_ref)
    o_ref[...] = h.astype(o_ref.dtype)


def prepare_params(params):
    """One-time prep (NOT on the forward path).

    params: list of (W, b) with W in PyTorch (out, in) layout, f32.
    Returns list of (W_padded_bf16 (in_p, out_p), b_padded_f32 (1, out_p)).
    """
    prepped = []
    for (w, b) in params:
        out_f, in_f = w.shape
        in_p = _round_up(in_f, LANE)
        out_p = _round_up(out_f, LANE)
        wt = jnp.asarray(w, jnp.float32).T                       # (in, out)
        wt = jnp.pad(wt, ((0, in_p - in_f), (0, out_p - out_f)))
        bp = jnp.pad(jnp.asarray(b, jnp.float32), (0, out_p - out_f))[None, :]
        prepped.append((wt.astype(jnp.bfloat16), bp))
    return prepped


def two_layer_net_forward(x, prepped, d_out):
    """Forward pass. `prepped` comes from prepare_params(); d_out is the true
    (unpadded) output width."""
    B, d_in = x.shape
    d_in_p = prepped[0][0].shape[0]
    d_out_p = prepped[-1][0].shape[1]

    # Batch tile: >=256 rows at scale (amortizes ~0.35us/step pipeline overhead
    # and gives the MXU a tall LHS), otherwise the whole sublane-rounded batch.
    tb = 256 if B >= 256 else _round_up(max(B, 1), SUBLANE)
    b_pad = _round_up(B, tb)

    x_p = jnp.pad(jnp.asarray(x, jnp.float32),
                  ((0, b_pad - B), (0, d_in_p - d_in)))

    flat_inputs = [x_p]
    in_specs = [pl.BlockSpec((tb, d_in_p), lambda i: (i, 0))]
    for (w, b) in prepped:
        flat_inputs.append(w)
        flat_inputs.append(b)
        # Constant block index => weights/biases stay resident in VMEM.
        in_specs.append(pl.BlockSpec(w.shape, lambda i: (0, 0)))
        in_specs.append(pl.BlockSpec(b.shape, lambda i: (0, 0)))
    out_spec = pl.BlockSpec((tb, d_out_p), lambda i: (i, 0))

    # Advisory cost estimate for the surrounding XLA schedule.
    flops = sum(2 * b_pad * w.shape[0] * w.shape[1] for (w, _) in prepped)
    bytes_accessed = (x_p.size * 4 + b_pad * d_out_p * 4
                      + sum(w.size * 2 + b.size * 4 for (w, b) in prepped))

    # Explicit VMEM budget: 2x double-buffered in/out tiles + resident
    # weights/biases + largest f32 intermediate + compiler headroom.
    # Capped at 64 MiB so the same sizing holds on v7x.
    widest = max(w.shape[1] for (w, _) in prepped)
    vmem_needed = (2 * tb * d_in_p * 4 + 2 * tb * d_out_p * 4
                   + sum(w.size * 2 + b.size * 4 for (w, b) in prepped)
                   + 2 * tb * widest * 4)
    vmem_limit = min(vmem_needed + (8 << 20), 64 << 20)

    out_padded = pl.pallas_call(
        _mlp_kernel,
        out_shape=jax.ShapeDtypeStruct((b_pad, d_out_p), jnp.float32),
        grid=(b_pad // tb,),
        in_specs=in_specs,
        out_specs=out_spec,
        compiler_params=pltpu.CompilerParams(
            dimension_semantics=("parallel",),   # dual-TC sharding on v7x
            vmem_limit_bytes=vmem_limit),
        cost_estimate=pl.CostEstimate(
            flops=flops, transcendentals=0, bytes_accessed=bytes_accessed),
    )(*flat_inputs)

    return out_padded[:B, :d_out]


def init_linear(key, in_features, out_features):
    """Deterministic PyTorch-style Linear init: U(-1/sqrt(in), 1/sqrt(in))."""
    kw, kb = jax.random.split(key)
    bound = 1.0 / math.sqrt(in_features)
    w = jax.random.uniform(kw, (out_features, in_features), jnp.float32,
                           minval=-bound, maxval=bound)
    b = jax.random.uniform(kb, (out_features,), jnp.float32,
                           minval=-bound, maxval=bound)
    return w, b


def reference_forward_f32(x, params):
    h = jnp.asarray(x, jnp.float32)
    for (w, b) in params:
        h = jnp.maximum(h @ w.T + b, 0.0)
    return h


def reference_forward_bf16(x, params):
    """Same dtype policy as the kernel: bf16 matmul inputs, f32 accumulate,
    f32 bias + ReLU."""
    h = jnp.asarray(x, jnp.float32)
    for (w, b) in params:
        wt = jnp.asarray(w, jnp.float32).T.astype(jnp.bfloat16)
        y = jnp.dot(h.astype(jnp.bfloat16), wt,
                    preferred_element_type=jnp.float32)
        h = jnp.maximum(y + b, 0.0)
    return h


if __name__ == "__main__":
    # Small shapes consistent with the module: D_in -> H -> H -> H -> H -> D_out.
    B, D_in, H, D_out = 8, 64, 128, 32

    key = jax.random.PRNGKey(0)
    kx, k1, k2, k3, k4, k5 = jax.random.split(key, 6)

    x = jax.random.normal(kx, (B, D_in), jnp.float32)

    params = [
        init_linear(k1, D_in, H),
        init_linear(k2, H, H),
        init_linear(k3, H, H),
        init_linear(k4, H, H),
        init_linear(k5, H, D_out),
    ]

    # One-time weight prep (transpose / bf16 cast / lane padding) — hoisted
    # out of the forward path.
    prepped = prepare_params(params)

    out = two_layer_net_forward(x, prepped, D_out)
    out = jax.block_until_ready(out)
    assert out.shape == (B, D_out)

    # Tight check vs a reference that uses the same bf16-matmul dtype policy.
    ref_bf16 = reference_forward_bf16(x, params)
    assert jnp.allclose(out, ref_bf16, atol=1e-4, rtol=1e-4)

    # Loose sanity check vs the pure-f32 PyTorch-equivalent math.
    ref_f32 = reference_forward_f32(x, params)
    assert jnp.allclose(out, ref_f32, atol=5e-2, rtol=5e-2)

    print("KERNEL_OK")
</pallas_src>

<mosaic_0001>
module attributes {stable_mosaic.version = 11 : i64} {
  func.func @_mlp_kernel(%arg0: i32, %arg1: memref<8x128xf32, #tpu.memory_space<vmem>>, %arg2: memref<128x128xbf16, #tpu.memory_space<vmem>>, %arg3: memref<1x128xf32, #tpu.memory_space<vmem>>, %arg4: memref<128x128xbf16, #tpu.memory_space<vmem>>, %arg5: memref<1x128xf32, #tpu.memory_space<vmem>>, %arg6: memref<128x128xbf16, #tpu.memory_space<vmem>>, %arg7: memref<1x128xf32, #tpu.memory_space<vmem>>, %arg8: memref<128x128xbf16, #tpu.memory_space<vmem>>, %arg9: memref<1x128xf32, #tpu.memory_space<vmem>>, %arg10: memref<128x128xbf16, #tpu.memory_space<vmem>>, %arg11: memref<1x128xf32, #tpu.memory_space<vmem>>, %arg12: memref<8x128xf32, #tpu.memory_space<vmem>>) attributes {dimension_semantics = [#tpu.dimension_semantics<parallel>], iteration_bounds = array<i64: 1>, scalar_prefetch = 0 : i64, scratch_operands = 0 : i64, tpu.core_type = #tpu.core_type<tc>, window_params = [{transform_indices = @transform_0, window_bounds = array<i64: 8, 128>}, {pipeline_mode = #tpu.pipeline_mode<synchronous>, transform_indices = @transform_1, window_bounds = array<i64: 128, 128>}, {pipeline_mode = #tpu.pipeline_mode<synchronous>, transform_indices = @transform_2, window_bounds = array<i64: 1, 128>}, {pipeline_mode = #tpu.pipeline_mode<synchronous>, transform_indices = @transform_3, window_bounds = array<i64: 128, 128>}, {pipeline_mode = #tpu.pipeline_mode<synchronous>, transform_indices = @transform_4, window_bounds = array<i64: 1, 128>}, {pipeline_mode = #tpu.pipeline_mode<synchronous>, transform_indices = @transform_5, window_bounds = array<i64: 128, 128>}, {pipeline_mode = #tpu.pipeline_mode<synchronous>, transform_indices = @transform_6, window_bounds = array<i64: 1, 128>}, {pipeline_mode = #tpu.pipeline_mode<synchronous>, transform_indices = @transform_7, window_bounds = array<i64: 128, 128>}, {pipeline_mode = #tpu.pipeline_mode<synchronous>, transform_indices = @transform_8, window_bounds = array<i64: 1, 128>}, {pipeline_mode = #tpu.pipeline_mode<synchronous>, transform_indices = @transform_9, window_bounds = array<i64: 128, 128>}, {pipeline_mode = #tpu.pipeline_mode<synchronous>, transform_indices = @transform_10, window_bounds = array<i64: 1, 128>}, {transform_indices = @transform_11, window_bounds = array<i64: 8, 128>}]} {
    %c0 = arith.constant 0 : index
    %c0_0 = arith.constant 0 : index
    %0 = vector.load %arg1[%c0, %c0_0] : memref<8x128xf32, #tpu.memory_space<vmem>>, vector<8x128xf32>
    %1 = arith.truncf %0 : vector<8x128xf32> to vector<8x128xbf16>
    %c0_1 = arith.constant 0 : index
    %c0_2 = arith.constant 0 : index
    %2 = vector.load %arg2[%c0_1, %c0_2] : memref<128x128xbf16, #tpu.memory_space<vmem>>, vector<128x128xbf16>
    %cst = arith.constant dense<0.000000e+00> : vector<8x128xf32>
    %3 = tpu.matmul %1, %2, %cst {dimension_numbers = #tpu.dot_dimension_numbers<[1], [0], [0], [1], [0, 0, 1, 1], [], []>} : vector<8x128xbf16>, vector<128x128xbf16>, vector<8x128xf32> -> vector<8x128xf32>
    %c0_3 = arith.constant 0 : index
    %c0_4 = arith.constant 0 : index
    %4 = vector.load %arg3[%c0_3, %c0_4] : memref<1x128xf32, #tpu.memory_space<vmem>>, vector<1x128xf32>
    %5 = vector.broadcast %4 : vector<1x128xf32> to vector<8x128xf32>
    %6 = arith.addf %3, %5 : vector<8x128xf32>
    %cst_5 = arith.constant 0.000000e+00 : f32
    %7 = vector.broadcast %cst_5 : f32 to vector<8x128xf32>
    %8 = arith.maximumf %6, %7 : vector<8x128xf32>
    %9 = arith.truncf %8 : vector<8x128xf32> to vector<8x128xbf16>
    %c0_6 = arith.constant 0 : index
    %c0_7 = arith.constant 0 : index
    %10 = vector.load %arg4[%c0_6, %c0_7] : memref<128x128xbf16, #tpu.memory_space<vmem>>, vector<128x128xbf16>
    %cst_8 = arith.constant dense<0.000000e+00> : vector<8x128xf32>
    %11 = tpu.matmul %9, %10, %cst_8 {dimension_numbers = #tpu.dot_dimension_numbers<[1], [0], [0], [1], [0, 0, 1, 1], [], []>} : vector<8x128xbf16>, vector<128x128xbf16>, vector<8x128xf32> -> vector<8x128xf32>
    %c0_9 = arith.constant 0 : index
    %c0_10 = arith.constant 0 : index
    %12 = vector.load %arg5[%c0_9, %c0_10] : memref<1x128xf32, #tpu.memory_space<vmem>>, vector<1x128xf32>
    %13 = vector.broadcast %12 : vector<1x128xf32> to vector<8x128xf32>
    %14 = arith.addf %11, %13 : vector<8x128xf32>
    %cst_11 = arith.constant 0.000000e+00 : f32
    %15 = vector.broadcast %cst_11 : f32 to vector<8x128xf32>
    %16 = arith.maximumf %14, %15 : vector<8x128xf32>
    %17 = arith.truncf %16 : vector<8x128xf32> to vector<8x128xbf16>
    %c0_12 = arith.constant 0 : index
    %c0_13 = arith.constant 0 : index
    %18 = vector.load %arg6[%c0_12, %c0_13] : memref<128x128xbf16, #tpu.memory_space<vmem>>, vector<128x128xbf16>
    %cst_14 = arith.constant dense<0.000000e+00> : vector<8x128xf32>
    %19 = tpu.matmul %17, %18, %cst_14 {dimension_numbers = #tpu.dot_dimension_numbers<[1], [0], [0], [1], [0, 0, 1, 1], [], []>} : vector<8x128xbf16>, vector<128x128xbf16>, vector<8x128xf32> -> vector<8x128xf32>
    %c0_15 = arith.constant 0 : index
    %c0_16 = arith.constant 0 : index
    %20 = vector.load %arg7[%c0_15, %c0_16] : memref<1x128xf32, #tpu.memory_space<vmem>>, vector<1x128xf32>
    %21 = vector.broadcast %20 : vector<1x128xf32> to vector<8x128xf32>
    %22 = arith.addf %19, %21 : vector<8x128xf32>
    %cst_17 = arith.constant 0.000000e+00 : f32
    %23 = vector.broadcast %cst_17 : f32 to vector<8x128xf32>
    %24 = arith.maximumf %22, %23 : vector<8x128xf32>
    %25 = arith.truncf %24 : vector<8x128xf32> to vector<8x128xbf16>
    %c0_18 = arith.constant 0 : index
    %c0_19 = arith.constant 0 : index
    %26 = vector.load %arg8[%c0_18, %c0_19] : memref<128x128xbf16, #tpu.memory_space<vmem>>, vector<128x128xbf16>
    %cst_20 = arith.constant dense<0.000000e+00> : vector<8x128xf32>
    %27 = tpu.matmul %25, %26, %cst_20 {dimension_numbers = #tpu.dot_dimension_numbers<[1], [0], [0], [1], [0, 0, 1, 1], [], []>} : vector<8x128xbf16>, vector<128x128xbf16>, vector<8x128xf32> -> vector<8x128xf32>
    %c0_21 = arith.constant 0 : index
    %c0_22 = arith.constant 0 : index
    %28 = vector.load %arg9[%c0_21, %c0_22] : memref<1x128xf32, #tpu.memory_space<vmem>>, vector<1x128xf32>
    %29 = vector.broadcast %28 : vector<1x128xf32> to vector<8x128xf32>
    %30 = arith.addf %27, %29 : vector<8x128xf32>
    %cst_23 = arith.constant 0.000000e+00 : f32
    %31 = vector.broadcast %cst_23 : f32 to vector<8x128xf32>
    %32 = arith.maximumf %30, %31 : vector<8x128xf32>
    %33 = arith.truncf %32 : vector<8x128xf32> to vector<8x128xbf16>
    %c0_24 = arith.constant 0 : index
    %c0_25 = arith.constant 0 : index
    %34 = vector.load %arg10[%c0_24, %c0_25] : memref<128x128xbf16, #tpu.memory_space<vmem>>, vector<128x128xbf16>
    %cst_26 = arith.constant dense<0.000000e+00> : vector<8x128xf32>
    %35 = tpu.matmul %33, %34, %cst_26 {dimension_numbers = #tpu.dot_dimension_numbers<[1], [0], [0], [1], [0, 0, 1, 1], [], []>} : vector<8x128xbf16>, vector<128x128xbf16>, vector<8x128xf32> -> vector<8x128xf32>
    %c0_27 = arith.constant 0 : index
    %c0_28 = arith.constant 0 : index
    %36 = vector.load %arg11[%c0_27, %c0_28] : memref<1x128xf32, #tpu.memory_space<vmem>>, vector<1x128xf32>
    %37 = vector.broadcast %36 : vector<1x128xf32> to vector<8x128xf32>
    %38 = arith.addf %35, %37 : vector<8x128xf32>
    %cst_29 = arith.constant 0.000000e+00 : f32
    %39 = vector.broadcast %cst_29 : f32 to vector<8x128xf32>
    %40 = arith.maximumf %38, %39 : vector<8x128xf32>
    %c0_30 = arith.constant 0 : index
    %c0_31 = arith.constant 0 : index
    %41 = vector.load %arg12[%c0_30, %c0_31] : memref<8x128xf32, #tpu.memory_space<vmem>>, vector<8x128xf32>
    tpu.vector_store %arg12[%c0_30, %c0_31], %40 {strides = array<i32>} : memref<8x128xf32, #tpu.memory_space<vmem>>, vector<8x128xf32>,
    return
  }
  func.func @transform_0(%arg0: i32) -> (i32, i32) {
    %c0_i32 = arith.constant 0 : i32
    %c0_i32_0 = arith.constant 0 : i32
    return %arg0, %c0_i32 : i32, i32
  }
  func.func @transform_1(%arg0: i32) -> (i32, i32) {
    %c0_i32 = arith.constant 0 : i32
    %c0_i32_0 = arith.constant 0 : i32
    %c0_i32_1 = arith.constant 0 : i32
    return %c0_i32, %c0_i32_0 : i32, i32
  }
  func.func @transform_2(%arg0: i32) -> (i32, i32) {
    %c0_i32 = arith.constant 0 : i32
    %c0_i32_0 = arith.constant 0 : i32
    %c0_i32_1 = arith.constant 0 : i32
    return %c0_i32, %c0_i32_0 : i32, i32
  }
  func.func @transform_3(%arg0: i32) -> (i32, i32) {
    %c0_i32 = arith.constant 0 : i32
    %c0_i32_0 = arith.constant 0 : i32
    %c0_i32_1 = arith.constant 0 : i32
    return %c0_i32, %c0_i32_0 : i32, i32
  }
  func.func @transform_4(%arg0: i32) -> (i32, i32) {
    %c0_i32 = arith.constant 0 : i32
    %c0_i32_0 = arith.constant 0 : i32
    %c0_i32_1 = arith.constant 0 : i32
    return %c0_i32, %c0_i32_0 : i32, i32
  }
  func.func @transform_5(%arg0: i32) -> (i32, i32) {
    %c0_i32 = arith.constant 0 : i32
    %c0_i32_0 = arith.constant 0 : i32
    %c0_i32_1 = arith.constant 0 : i32
    return %c0_i32, %c0_i32_0 : i32, i32
  }
  func.func @transform_6(%arg0: i32) -> (i32, i32) {
    %c0_i32 = arith.constant 0 : i32
    %c0_i32_0 = arith.constant 0 : i32
    %c0_i32_1 = arith.constant 0 : i32
    return %c0_i32, %c0_i32_0 : i32, i32
  }
  func.func @transform_7(%arg0: i32) -> (i32, i32) {
    %c0_i32 = arith.constant 0 : i32
    %c0_i32_0 = arith.constant 0 : i32
    %c0_i32_1 = arith.constant 0 : i32
    return %c0_i32, %c0_i32_0 : i32, i32
  }
  func.func @transform_8(%arg0: i32) -> (i32, i32) {
    %c0_i32 = arith.constant 0 : i32
    %c0_i32_0 = arith.constant 0 : i32
    %c0_i32_1 = arith.constant 0 : i32
    return %c0_i32, %c0_i32_0 : i32, i32
  }
  func.func @transform_9(%arg0: i32) -> (i32, i32) {
    %c0_i32 = arith.constant 0 : i32
    %c0_i32_0 = arith.constant 0 : i32
    %c0_i32_1 = arith.constant 0 : i32
    return %c0_i32, %c0_i32_0 : i32, i32
  }
  func.func @transform_10(%arg0: i32) -> (i32, i32) {
    %c0_i32 = arith.constant 0 : i32
    %c0_i32_0 = arith.constant 0 : i32
    %c0_i32_1 = arith.constant 0 : i32
    return %c0_i32, %c0_i32_0 : i32, i32
  }
  func.func @transform_11(%arg0: i32) -> (i32, i32) {
    %c0_i32 = arith.constant 0 : i32
    %c0_i32_0 = arith.constant 0 : i32
    return %arg0, %c0_i32 : i32, i32
  }
}

</mosaic_0001>

<bundles_post_ra>
// kernel: tpu_custom_call.1
= control target key start
LH: loop header
LB: loop body
LE: loop exit
PB: predicated region body
PF: predicated region fallthrough
CT: control target
= control target key end

     0   :  { %16 = vsyncpa [#allocation3], 0  ;;  %s1345_s0 = inlined_call_operand.hbm [shape: f32[8,128], index: 0, kind: input, shape index: {}]   ;;  %s1346_s1 = inlined_call_operand.hbm [shape: bf16[128,128], index: 1, kind: input, shape index: {}]   ;;  %s1347_s2 = inlined_call_operand.vmem [shape: f32[1,128], index: 2, kind: input, shape index: {}]   ;;  %s1348_s3 = inlined_call_operand.hbm [shape: bf16[128,128], index: 3, kind: input, shape index: {}]   ;;  %s1349_s4 = inlined_call_operand.vmem [shape: f32[1,128], index: 4, kind: input, shape index: {}]   ;;  %s1350_s5 = inlined_call_operand.hbm [shape: bf16[128,128], index: 5, kind: input, shape index: {}]   ;;  %s1351_s6 = inlined_call_operand.vmem [shape: f32[1,128], index: 6, kind: input, shape index: {}]   ;;  %s1352_s7 = inlined_call_operand.hbm [shape: bf16[128,128], index: 7, kind: input, shape index: {}]   ;;  %s1353_s8 = inlined_call_operand.vmem [shape: f32[1,128], index: 8, kind: input, shape index: {}]   ;;  %s1354_s9 = inlined_call_operand.hbm [shape: bf16[128,128], index: 9, kind: input, shape index: {}]   ;;  %s1355_s10 = inlined_call_operand.vmem [shape: f32[1,128], index: 10, kind: input, shape index: {}]   ;;  %s1356_s11 = inlined_call_operand.hbm [shape: f32[8,128], index: 11, kind: output, shape index: {}]  }
   0x1   :  { %17 = vsyncpa [#allocation6], 0 }
   0x2   :  { %18 = vsyncpa [#allocation9], 0 }
   0x3   :  { %19 = vsyncpa [#allocation12], 0 }
   0x4   :  { %20 = vsyncpa [#allocation4], 0  ;;  %s1110_s17 = smov [#allocation5]   ;;  %s946_s21 = scalar_lea.hbm %s1346_s1, 1024 }
   0x5   :  { %s36_s18 = sshll.u32 %s1110_s17, 4  ;;  %p947_p0 = scmp.ne.s32.totalorder %s1346_s1, %s946_s21  ;;  %s37_s18 = int_to_ptr.vmem [resolvable:$true] %s36_s18 }
   0x6   :  { %p950_p1 = scmp.lt.u32.totalorder %s946_s21, %s1346_s1 }
   0x8   :  { %p952_p2 = pnand %p950_p1, %p947_p0 }
   0xa   :  { %955 = shalt.err (!%p952_p2)
}
   0xb   :  { %s956_s26 = scalar_lea.vmem %s37_s18, 1024  ;;  %p961_p4 = scmp.lt.s32.totalorder %s37_s18, %s37_s18 }
   0xc   :  { %p957_p3 = scmp.ne.s32.totalorder %s37_s18, %s956_s26  ;;  %p962_p5 = scmp.lt.s32.totalorder %s956_s26, %s956_s26 }
   0xe   :  { %p963_p6 = por %p962_p5, %p961_p4 }
  0x10   :  { %p964_p7 = pnand %p963_p6, %p957_p3 }
  0x12   :  { %967 = shalt.err (!%p964_p7)
}
  0x13   :  { %s1111_s27 = smov 64   ;;  %s1112_s28 = smov 4  }
  0x14   :  { %42 = dma.hbm_to_vmem [thread:$0]  %s1346_s1, 1024, %s37_s18, [#allocation6], %s1111_s27, %s1111_s27, %s1112_s28  }
  0x15   :  { %s1113_s12 = smov [#allocation8]   ;;  %s1114_s14 = smov [#allocation2]  }
  0x16   :  { %s64_s13 = sshll.u32 %s1113_s12, 4  ;;  %s27_s15 = sshll.u32 %s1114_s14, 4  ;;  %s65_s13 = int_to_ptr.vmem [resolvable:$true] %s64_s13  ;;  %s28_s15 = int_to_ptr.vmem [resolvable:$true] %s27_s15 }
  0x17   :  { %s968_s19 = scalar_lea.hbm %s1350_s5, 1024 }
  0x18   :  { %p969_p8 = scmp.ne.s32.totalorder %s1350_s5, %s968_s19  ;;  %p972_p9 = scmp.lt.u32.totalorder %s968_s19, %s1350_s5 }
  0x1a   :  { %p974_p10 = pnand %p972_p9, %p969_p8 }
  0x1c   :  { %977 = shalt.err (!%p974_p10)
}
  0x1d   :  { %s978_s1 = scalar_lea.vmem %s65_s13, 1024  ;;  %p983_p12 = scmp.lt.s32.totalorder %s65_s13, %s65_s13 }
  0x1e   :  { %p979_p11 = scmp.ne.s32.totalorder %s65_s13, %s978_s1  ;;  %p984_p13 = scmp.lt.s32.totalorder %s978_s1, %s978_s1 }
  0x20   :  { %p985_p0 = por %p984_p13, %p983_p12 }
  0x22   :  { %p986_p1 = pnand %p985_p0, %p979_p11 }
  0x24   :  { %989 = shalt.err (!%p986_p1)
}
  0x25   :  { %70 = dma.hbm_to_vmem [thread:$0]  %s1350_s5, 1024, %s65_s13, [#allocation9], %s1111_s27, %s1111_s27, %s1112_s28  }
  0x26   :  { %s990_s29 = scalar_lea.hbm %s1345_s0, 128 }
  0x27   :  { %p991_p2 = scmp.ne.s32.totalorder %s1345_s0, %s990_s29  ;;  %p994_p3 = scmp.lt.u32.totalorder %s990_s29, %s1345_s0 }
  0x29   :  { %p996_p4 = pnand %p994_p3, %p991_p2 }
  0x2b   :  { %999 = shalt.err (!%p996_p4)
}
  0x2c   :  { %s1000_s17 = scalar_lea.vmem %s28_s15, 128  ;;  %p1005_p6 = scmp.lt.s32.totalorder %s28_s15, %s28_s15 }
  0x2d   :  { %p1001_p5 = scmp.ne.s32.totalorder %s28_s15, %s1000_s17  ;;  %p1006_p7 = scmp.lt.s32.totalorder %s1000_s17, %s1000_s17 }
  0x2f   :  { %p1007_p8 = por %p1006_p7, %p1005_p6 }
  0x31   :  { %p1008_p9 = pnand %p1007_p8, %p1001_p5 }
  0x33   :  { %1011 = shalt.err (!%p1008_p9)
}
  0x34   :  { %30 = dma.hbm_to_vmem [thread:$0]  %s1345_s0, 128, %s28_s15, [#allocation3]  }
  0x35   :  { %s1115_s19 = smov [#allocation7]   ;;  %s1116_s21 = smov [#allocation10]  }
  0x36   :  { %s50_s20 = sshll.u32 %s1115_s19, 4  ;;  %s78_s22 = sshll.u32 %s1116_s21, 4  ;;  %s51_s20 = int_to_ptr.vmem [resolvable:$true] %s50_s20  ;;  %s79_s22 = int_to_ptr.vmem [resolvable:$true] %s78_s22 }
  0x37   :  { %s1012_s18 = scalar_lea.hbm %s1348_s3, 1024 }
  0x38   :  { %p1013_p10 = scmp.ne.s32.totalorder %s1348_s3, %s1012_s18  ;;  %p1016_p11 = scmp.lt.u32.totalorder %s1012_s18, %s1348_s3 }
  0x3a   :  { %p1018_p12 = pnand %p1016_p11, %p1013_p10 }
  0x3c   :  { %1021 = shalt.err (!%p1018_p12)
}
  0x3d   :  { %s1022_s0 = scalar_lea.vmem %s51_s20, 1024  ;;  %p1027_p0 = scmp.lt.s32.totalorder %s51_s20, %s51_s20 }
  0x3e   :  { %p1023_p13 = scmp.ne.s32.totalorder %s51_s20, %s1022_s0  ;;  %p1028_p1 = scmp.lt.s32.totalorder %s1022_s0, %s1022_s0 }
  0x40   :  { %p1029_p2 = por %p1028_p1, %p1027_p0 }
  0x42   :  { %p1030_p3 = pnand %p1029_p2, %p1023_p13 }
  0x44   :  { %1033 = shalt.err (!%p1030_p3)
}
  0x45   :  { %56 = dma.hbm_to_vmem [thread:$0]  %s1348_s3, 1024, %s51_s20, [#allocation6], %s1111_s27, %s1111_s27, %s1112_s28  }
  0x46   :  { %s1034_s16 = scalar_lea.hbm %s1352_s7, 1024 }
  0x47   :  { %p1035_p4 = scmp.ne.s32.totalorder %s1352_s7, %s1034_s16  ;;  %p1038_p5 = scmp.lt.u32.totalorder %s1034_s16, %s1352_s7 }
  0x49   :  { %p1040_p6 = pnand %p1038_p5, %p1035_p4 }
  0x4b   :  { %1043 = shalt.err (!%p1040_p6)
}
  0x4c   :  { %s1044_s21 = scalar_lea.vmem %s79_s22, 1024  ;;  %p1049_p8 = scmp.lt.s32.totalorder %s79_s22, %s79_s22 }
  0x4d   :  { %p1045_p7 = scmp.ne.s32.totalorder %s79_s22, %s1044_s21  ;;  %p1050_p9 = scmp.lt.s32.totalorder %s1044_s21, %s1044_s21 }
  0x4f   :  { %p1051_p10 = por %p1050_p9, %p1049_p8 }
  0x51   :  { %p1052_p11 = pnand %p1051_p10, %p1045_p7 }
  0x53   :  { %1055 = shalt.err (!%p1052_p11)
}
  0x54   :  { %84 = dma.hbm_to_vmem [thread:$0]  %s1352_s7, 1024, %s79_s22, [#allocation9], %s1111_s27, %s1111_s27, %s1112_s28  }
  0x55   :  { %s1117_s23 = smov [#allocation11]   ;;  %s1056_s25 = scalar_lea.hbm %s1354_s9, 1024 }
  0x56   :  { %s92_s1 = sshll.u32 %s1117_s23, 4  ;;  %p1057_p12 = scmp.ne.s32.totalorder %s1354_s9, %s1056_s25  ;;  %s93_s1 = int_to_ptr.vmem [resolvable:$true] %s92_s1 }
  0x57   :  { %p1060_p13 = scmp.lt.u32.totalorder %s1056_s25, %s1354_s9 }
  0x59   :  { %p1062_p0 = pnand %p1060_p13, %p1057_p12 }
  0x5b   :  { %1065 = shalt.err (!%p1062_p0)
}
  0x5c   :  { %s1066_s30 = scalar_lea.vmem %s93_s1, 1024  ;;  %p1071_p2 = scmp.lt.s32.totalorder %s93_s1, %s93_s1 }
  0x5d   :  { %p1067_p1 = scmp.ne.s32.totalorder %s93_s1, %s1066_s30  ;;  %p1072_p3 = scmp.lt.s32.totalorder %s1066_s30, %s1066_s30 }
  0x5f   :  { %p1073_p4 = por %p1072_p3, %p1071_p2 }
  0x61   :  { %p1074_p5 = pnand %p1073_p4, %p1067_p1 }
  0x63   :  { %1077 = shalt.err (!%p1074_p5)
}
  0x64   :  { %98 = dma.hbm_to_vmem [thread:$0]  %s1354_s9, 1024, %s93_s1, [#allocation12], %s1111_s27, %s1111_s27, %s1112_s28  }
  0x65   :  { %1100 = dma.done.wait [#allocation3], 128  }
  0x66   :  { %1101 = vsyncadd [#allocation3], 4294967168 }
  0x67   :  { %1102 = dma.done.wait [#allocation6], 2048  }
  0x68   :  { %1103 = vsyncadd [#allocation6], 4294965248 }
  0x69   :  { %1104 = dma.done.wait [#allocation9], 2048  }
  0x6a   :  { %1105 = vsyncadd [#allocation9], 4294965248 }
  0x6b   :  { %1106 = dma.done.wait [#allocation12], 1024  }
  0x6c   :  { %1107 = vsyncadd [#allocation12], 4294966272  ;;  %v1118_v0 = vmov 0.0   ;;  %vm1119_vm0 = vmmov 0   ;;  %v906_v1 = vld [vmem:[#allocation5] sm:$0xff]   ;;  %v907_v2 = vld [vmem:[#allocation5 + $0x8] sm:$0xff]  }
  0x6d   :  { %795 = vmatprep.subr.bf16.mxu0 %v1118_v0  ;;  %811 = vmatprep.mubr.msk.bf16.mxu0 %vm1119_vm0, %v1118_v0  ;;  %v908_v3 = vld [vmem:[#allocation5 + $0x10] sm:$0xff]   ;;  %v914_v4 = vld [vmem:[#allocation7] sm:$0xff]   ;;  %v909_v5 = vld [vmem:[#allocation5 + $0x18] sm:$0xff]   ;;  %s1120_s5 = smov [#allocation13]  }
  0x6e   :  { %815 = vmatprep.subr.bf16.mxu1 %v1118_v0  ;;  %831 = vmatprep.mubr.msk.bf16.mxu1 %vm1119_vm0, %v1118_v0  ;;  %v915_v6 = vld [vmem:[#allocation7 + $0x8] sm:$0xff]   ;;  %v910_v7 = vld [vmem:[#allocation5 + $0x20] sm:$0xff]   ;;  %v916_v8 = vld [vmem:[#allocation7 + $0x10] sm:$0xff]   ;;  %s693_s13 = sshll.u32 %s1120_s5, 4  ;;  %s694_s13 = int_to_ptr.vmem [resolvable:$true] %s693_s13 }
  0x6f   :  { %796 = vmatpush3.bf16.msra.mxu0 %v906_v1  ;;  %816 = vmatpush3.bf16.msra.mxu1 %v914_v4  ;;  %v911_v9 = vld [vmem:[#allocation5 + $0x28] sm:$0xff]   ;;  %v917_v10 = vld [vmem:[#allocation7 + $0x18] sm:$0xff]   ;;  %v912_v11 = vld [vmem:[#allocation5 + $0x30] sm:$0xff]   ;;  %p1083_p7 = scmp.lt.s32.totalorder %s694_s13, %s694_s13 }
  0x70   :  { %797 = vmatprep.subr.bf16.mxu0 %v1118_v0  ;;  %817 = vmatprep.subr.bf16.mxu1 %v1118_v0  ;;  %v918_v12 = vld [vmem:[#allocation7 + $0x20] sm:$0xff]   ;;  %v913_v13 = vld [vmem:[#allocation5 + $0x38] sm:$0xff]   ;;  %v919_v15 = vld [vmem:[#allocation7 + $0x28] sm:$0xff]  }
  0x71   :  { %v120_v14 = vld [vmem:[#allocation2] sm:$0xff]  ;;  %v920_v17 = vld [vmem:[#allocation7 + $0x30] sm:$0xff]   ;;  %v922_v19 = vld [vmem:[#allocation8] sm:$0xff]  }
  0x72   :  { %v121_v16 = vpack.c.bf16 %v120_v14, %v120_v14  ;;  %v921_v18 = vld [vmem:[#allocation7 + $0x38] sm:$0xff]   ;;  %v923_v20 = vld [vmem:[#allocation8 + $0x8] sm:$0xff]   ;;  %v924_v21 = vld [vmem:[#allocation8 + $0x10] sm:$0xff]  }
  0x73   :  { %798 = vmatpush3.bf16.msra.mxu0 %v907_v2  ;;  %818 = vmatpush3.bf16.msra.mxu1 %v915_v6  ;;  %v925_v22 = vld [vmem:[#allocation8 + $0x18] sm:$0xff]   ;;  %v926_v23 = vld [vmem:[#allocation8 + $0x20] sm:$0xff]   ;;  %v927_v24 = vld [vmem:[#allocation8 + $0x28] sm:$0xff]  }
  0x74   :  { %799 = vmatprep.subr.bf16.mxu0 %v1118_v0  ;;  %819 = vmatprep.subr.bf16.mxu1 %v1118_v0  ;;  %v705_v25 = vld [vmem:[%s1347_s2] ss:$0 sm:$0xff]  ;;  %v928_v33 = vld [vmem:[#allocation8 + $0x30] sm:$0xff]   ;;  %v930_v35 = vld [vmem:[#allocation10] sm:$0xff]  }
  0x75   :  { %v929_v34 = vld [vmem:[#allocation8 + $0x38] sm:$0xff]   ;;  %v931_v36 = vld [vmem:[#allocation10 + $0x8] sm:$0xff]   ;;  %v932_v37 = vld [vmem:[#allocation10 + $0x10] sm:$0xff]  }
  0x76   :  { %v933_v38 = vld [vmem:[#allocation10 + $0x18] sm:$0xff]   ;;  %v934_v39 = vld [vmem:[#allocation10 + $0x20] sm:$0xff]   ;;  %v935_v40 = vld [vmem:[#allocation10 + $0x28] sm:$0xff]  }
  0x77   :  { %800 = vmatpush3.bf16.msra.mxu0 %v908_v3  ;;  %820 = vmatpush3.bf16.msra.mxu1 %v916_v8  ;;  %v714_v41 = vld [vmem:[%s1349_s4] ss:$0 sm:$0xff]  ;;  %v936_v49 = vld [vmem:[#allocation10 + $0x30] sm:$0xff]   ;;  %v938_v51 = vld [vmem:[#allocation11] sm:$0xff]  }
  0x78   :  { %801 = vmatprep.subr.bf16.mxu0 %v1118_v0  ;;  %821 = vmatprep.subr.bf16.mxu1 %v1118_v0  ;;  %v937_v50 = vld [vmem:[#allocation10 + $0x38] sm:$0xff]   ;;  %v939_v52 = vld [vmem:[#allocation11 + $0x8] sm:$0xff]   ;;  %v940_v53 = vld [vmem:[#allocation11 + $0x10] sm:$0xff]  }
  0x79   :  { %v941_v54 = vld [vmem:[#allocation11 + $0x18] sm:$0xff]   ;;  %v942_v55 = vld [vmem:[#allocation11 + $0x20] sm:$0xff]   ;;  %v943_v56 = vld [vmem:[#allocation11 + $0x28] sm:$0xff]  }
  0x7a   :  { %v723_v57 = vld [vmem:[%s1351_s6] ss:$0 sm:$0xff]  ;;  %v944_v2 = vld [vmem:[#allocation11 + $0x30] sm:$0xff]  }
  0x7b   :  { %802 = vmatpush3.bf16.msra.mxu0 %v909_v5  ;;  %822 = vmatpush3.bf16.msra.mxu1 %v917_v10  ;;  %v945_v3 = vld [vmem:[#allocation11 + $0x38] sm:$0xff]  }
  0x7c   :  { %803 = vmatprep.subr.bf16.mxu0 %v1118_v0  ;;  %823 = vmatprep.subr.bf16.mxu1 %v1118_v0  ;;  %v732_v4 = vld [vmem:[%s1353_s8] ss:$0 sm:$0xff]  ;;  %s1078_s8 = scalar_lea.vmem %s694_s13, 128 }
  0x7d   :  { %p1079_p6 = scmp.ne.s32.totalorder %s694_s13, %s1078_s8  ;;  %p1084_p8 = scmp.lt.s32.totalorder %s1078_s8, %s1078_s8 }
  0x7f   :  { %804 = vmatpush3.bf16.msra.mxu0 %v910_v7  ;;  %824 = vmatpush3.bf16.msra.mxu1 %v918_v12  ;;  %v741_v12 = vld [vmem:[%s1355_s10] ss:$0 sm:$0xff]  ;;  %p1085_p9 = por %p1084_p8, %p1083_p7 }
  0x80   :  { %805 = vmatprep.subr.bf16.mxu0 %v1118_v0  ;;  %825 = vmatprep.subr.bf16.mxu1 %v1118_v0 }
  0x81   :  { %p1086_p10 = pnand %p1085_p9, %p1079_p6 }
  0x83   :  { %806 = vmatpush3.bf16.msra.mxu0 %v911_v9  ;;  %826 = vmatpush3.bf16.msra.mxu1 %v919_v15 }
  0x84   :  { %807 = vmatprep.subr.bf16.mxu0 %v1118_v0  ;;  %827 = vmatprep.subr.bf16.mxu1 %v1118_v0 }
  0x87   :  { %808 = vmatpush3.bf16.msra.mxu0 %v912_v11  ;;  %828 = vmatpush3.bf16.msra.mxu1 %v920_v17 }
  0x88   :  { %809 = vmatprep.subr.bf16.mxu0 %v1118_v0  ;;  %829 = vmatprep.subr.bf16.mxu1 %v1118_v0 }
  0x8b   :  { %810 = vmatpush3.bf16.msra.mxu0 %v913_v13  ;;  %830 = vmatpush3.bf16.msra.mxu1 %v921_v18 }
  0x8c   :  { %835 = vmatprep.subr.bf16.mxu0 %v1118_v0  ;;  %855 = vmatprep.subr.bf16.mxu1 %v1118_v0 }
  0x8e   :  { %812 = vmatmul.mubr.bf16.vlgmr.msra.gmra.mrb[0].mxu0 %v121_v16 }
  0x8f   :  { %851 = vmatprep.mubr.msk.bf16.mxu0 %vm1119_vm0, %v1118_v0  ;;  %836 = vmatpush3.bf16.msra.mxu0 %v922_v19 }
  0x90   :  { %837 = vmatprep.subr.bf16.mxu0 %v1118_v0 }
  0x93   :  { %838 = vmatpush3.bf16.msra.mxu0 %v923_v20 }
  0x94   :  { %839 = vmatprep.subr.bf16.mxu0 %v1118_v0 }
  0x97   :  { %840 = vmatpush3.bf16.msra.mxu0 %v924_v21 }
  0x98   :  { %841 = vmatprep.subr.bf16.mxu0 %v1118_v0 }
  0x9b   :  { %842 = vmatpush3.bf16.msra.mxu0 %v925_v22 }
  0x9c   :  { %843 = vmatprep.subr.bf16.mxu0 %v1118_v0 }
  0x9f   :  { %844 = vmatpush3.bf16.msra.mxu0 %v926_v23 }
  0xa0   :  { %845 = vmatprep.subr.bf16.mxu0 %v1118_v0 }
  0xa3   :  { %846 = vmatpush3.bf16.msra.mxu0 %v927_v24 }
  0xa4   :  { %847 = vmatprep.subr.bf16.mxu0 %v1118_v0 }
  0xa7   :  { %848 = vmatpush3.bf16.msra.mxu0 %v928_v33 }
  0xa8   :  { %849 = vmatprep.subr.bf16.mxu0 %v1118_v0 }
  0xab   :  { %850 = vmatpush3.bf16.msra.mxu0 %v929_v34 }
  0xac   :  { %875 = vmatprep.subr.bf16.mxu0 %v1118_v0 }
 0x161   :  { %v227_v26 = vpop.f32.mrb[0].mxu0 }
 0x162   :  { %v228_v27 = vadd.f32 %v705_v25, %v227_v26  ;;  %v813_v28 = vpop.f32.mrb[1].mxu0 }
 0x163   :  { %v230_v29 = vpop.f32.mrb[2].mxu0 }
 0x164   :  { %v233_v30 = vmax.f32 %v228_v27, 0.0  ;;  %v814_v31 = vpop.f32.mrb[3].mxu0 }
 0x166   :  { %v234_v32 = vpack.c.bf16 %v233_v30, %v233_v30 }
 0x168   :  { %832 = vmatmul.mubr.bf16.vlgmr.msra.gmra.mrb[0].mxu1 %v234_v32 }
 0x169   :  { %871 = vmatprep.mubr.msk.bf16.mxu1 %vm1119_vm0, %v1118_v0  ;;  %856 = vmatpush3.bf16.msra.mxu1 %v930_v35 }
 0x16a   :  { %857 = vmatprep.subr.bf16.mxu1 %v1118_v0 }
 0x16d   :  { %858 = vmatpush3.bf16.msra.mxu1 %v931_v36 }
 0x16e   :  { %859 = vmatprep.subr.bf16.mxu1 %v1118_v0 }
 0x171   :  { %860 = vmatpush3.bf16.msra.mxu1 %v932_v37 }
 0x172   :  { %861 = vmatprep.subr.bf16.mxu1 %v1118_v0 }
 0x175   :  { %862 = vmatpush3.bf16.msra.mxu1 %v933_v38 }
 0x176   :  { %863 = vmatprep.subr.bf16.mxu1 %v1118_v0 }
 0x179   :  { %864 = vmatpush3.bf16.msra.mxu1 %v934_v39 }
 0x17a   :  { %865 = vmatprep.subr.bf16.mxu1 %v1118_v0 }
 0x17d   :  { %866 = vmatpush3.bf16.msra.mxu1 %v935_v40 }
 0x17e   :  { %867 = vmatprep.subr.bf16.mxu1 %v1118_v0 }
 0x181   :  { %868 = vmatpush3.bf16.msra.mxu1 %v936_v49 }
 0x182   :  { %869 = vmatprep.subr.bf16.mxu1 %v1118_v0 }
 0x185   :  { %870 = vmatpush3.bf16.msra.mxu1 %v937_v50 }
 0x23b   :  { %v340_v42 = vpop.f32.mrb[0].mxu1 }
 0x23c   :  { %v341_v43 = vadd.f32 %v714_v41, %v340_v42  ;;  %v833_v44 = vpop.f32.mrb[1].mxu1 }
 0x23d   :  { %v343_v45 = vpop.f32.mrb[2].mxu1 }
 0x23e   :  { %v346_v46 = vmax.f32 %v341_v43, 0.0  ;;  %v834_v47 = vpop.f32.mrb[3].mxu1 }
 0x240   :  { %v347_v48 = vpack.c.bf16 %v346_v46, %v346_v46 }
 0x242   :  { %852 = vmatmul.mubr.bf16.vlgmr.msra.gmra.mrb[4].mxu0 %v347_v48 }
 0x243   :  { %891 = vmatprep.mubr.msk.bf16.mxu0 %vm1119_vm0, %v1118_v0  ;;  %876 = vmatpush3.bf16.msra.mxu0 %v938_v51 }
 0x244   :  { %877 = vmatprep.subr.bf16.mxu0 %v1118_v0 }
 0x247   :  { %878 = vmatpush3.bf16.msra.mxu0 %v939_v52 }
 0x248   :  { %879 = vmatprep.subr.bf16.mxu0 %v1118_v0 }
 0x24b   :  { %880 = vmatpush3.bf16.msra.mxu0 %v940_v53 }
 0x24c   :  { %881 = vmatprep.subr.bf16.mxu0 %v1118_v0 }
 0x24f   :  { %882 = vmatpush3.bf16.msra.mxu0 %v941_v54 }
 0x250   :  { %883 = vmatprep.subr.bf16.mxu0 %v1118_v0 }
 0x253   :  { %884 = vmatpush3.bf16.msra.mxu0 %v942_v55 }
 0x254   :  { %885 = vmatprep.subr.bf16.mxu0 %v1118_v0 }
 0x257   :  { %886 = vmatpush3.bf16.msra.mxu0 %v943_v56 }
 0x258   :  { %887 = vmatprep.subr.bf16.mxu0 %v1118_v0 }
 0x25b   :  { %888 = vmatpush3.bf16.msra.mxu0 %v944_v2 }
 0x25c   :  { %889 = vmatprep.subr.bf16.mxu0 %v1118_v0 }
 0x25f   :  { %890 = vmatpush3.bf16.msra.mxu0 %v945_v3 }
 0x315   :  { %v453_v58 = vpop.f32.mrb[4].mxu0 }
 0x316   :  { %v454_v59 = vadd.f32 %v723_v57, %v453_v58  ;;  %v853_v60 = vpop.f32.mrb[5].mxu0 }
 0x317   :  { %v456_v61 = vpop.f32.mrb[6].mxu0 }
 0x318   :  { %v459_v62 = vmax.f32 %v454_v59, 0.0  ;;  %v854_v63 = vpop.f32.mrb[7].mxu0 }
 0x31a   :  { %v460_v1 = vpack.c.bf16 %v459_v62, %v459_v62 }
 0x31c   :  { %872 = vmatmul.mubr.bf16.vlgmr.msra.gmra.mrb[4].mxu1 %v460_v1 }
 0x3ef   :  { %v566_v5 = vpop.f32.mrb[4].mxu1 }
 0x3f0   :  { %v567_v6 = vadd.f32 %v732_v4, %v566_v5  ;;  %v873_v7 = vpop.f32.mrb[5].mxu1 }
 0x3f1   :  { %v569_v8 = vpop.f32.mrb[6].mxu1 }
 0x3f2   :  { %v572_v9 = vmax.f32 %v567_v6, 0.0  ;;  %v874_v10 = vpop.f32.mrb[7].mxu1 }
 0x3f4   :  { %v573_v11 = vpack.c.bf16 %v572_v9, %v572_v9 }
 0x3f6   :  { %892 = vmatmul.mubr.bf16.vlgmr.msra.gmra.mrb[8].mxu0 %v573_v11 }
 0x4c9   :  { %v679_v13 = vpop.f32.mrb[8].mxu0 }
 0x4ca   :  { %v680_v0 = vadd.f32 %v741_v12, %v679_v13  ;;  %v893_v14 = vpop.f32.mrb[9].mxu0 }
 0x4cb   :  { %v682_v15 = vpop.f32.mrb[10].mxu0 }
 0x4cc   :  { %v685_v16 = vmax.f32 %v680_v0, 0.0  ;;  %v894_v17 = vpop.f32.mrb[11].mxu0 }
 0x4ce   :  { %686 = vst [vmem:[#allocation13] sm:$0xff] %v685_v16 }
 0x4cf   :  { %1089 = shalt.err (!%p1086_p10)
}
 0x4d0   :  { %s1090_s10 = scalar_lea.hbm %s1356_s11, 128 }
 0x4d1   :  { %p1091_p11 = scmp.ne.s32.totalorder %s1356_s11, %s1090_s10  ;;  %p1094_p12 = scmp.lt.u32.totalorder %s1090_s10, %s1356_s11 }
 0x4d3   :  { %p1096_p13 = pnand %p1094_p12, %p1091_p11 }
 0x4d5   :  { %1099 = shalt.err (!%p1096_p13)
}
 0x4d6   :  { %696 = dma.vmem_to_hbm [thread:$0]  %s694_s13, 128, %s1356_s11, [#allocation4]  }
 0x4d7   :  { %1108 = dma.done.wait [#allocation4], 128  }
 0x4d8   :  { %1109 = vsyncadd [#allocation4], 4294967168 }
 0x4d9   :  { %700 = vsyncpa [#allocation3], 1 }
 0x4da   :  { %701 = vsyncpa [#allocation6], 1 }
 0x4db   :  { %702 = vsyncpa [#allocation9], 1 }
 0x4dc   :  { %703 = vsyncpa [#allocation12], 1 }
 0x4dd   :  { %704 = vsyncpa [#allocation4], 1 }

</bundles_post_ra>
